<compile_context>
chip_gen: v7x
topology: tpu7x:2x2x1
jax: 0.10.0
libtpu: 0.0.40
codegen_flags: <defaults>
</compile_context>

<pallas_src>
import functools

import jax
import jax.numpy as jnp
from jax.experimental import pallas as pl
from jax.experimental.pallas import tpu as pltpu


def _cdiv(a, b):
    return -(-a // b)


def _round_up(a, b):
    return _cdiv(a, b) * b


def _pick_row_tile(M, tm):
    # Multiple of 16 (bf16 sublane packing), no larger than the padded row count.
    tm = max(16, min(_round_up(tm, 16), _round_up(M, 16)))
    n_row = _cdiv(M, tm)
    if n_row > 1 and n_row % 2 == 1:
        # Prefer an even number of row tiles so v7x's two TensorCores split the
        # "parallel" row axis evenly.
        tm_alt = max(16, _round_up(_cdiv(M, n_row + 1), 16))
        if _cdiv(M, tm_alt) % 2 == 0:
            tm = tm_alt
    return tm


def _logits_lse_kernel(x_ref, w_ref, b_ref, logits_ref, lse_ref, m_sc, l_sc, *, vocab, tn):
    # x_ref:      (tm, hidden)  bf16
    # w_ref:      (tn, hidden)  bf16   (native nn.Linear layout; contraction over hidden)
    # b_ref:      (1, tn)       f32
    # logits_ref: (tm, tn)      bf16   intermediate, written every vocab tile
    # lse_ref:    (tm, 1)       f32    written once, at the last vocab tile
    # m_sc, l_sc: (tm, 1)       f32    online-softmax running max / sum-exp
    j = pl.program_id(1)

    @pl.when(j == 0)
    def _():
        m_sc[...] = jnp.full_like(m_sc, -jnp.inf)
        l_sc[...] = jnp.zeros_like(l_sc)

    # (tm, hidden) x (tn, hidden) contracted over hidden == x @ W^T on the MXU, bf16 in,
    # f32 accumulation.  Weight stays in its native (vocab, hidden) layout so the wrapper
    # never transposes it through HBM.
    logits = jax.lax.dot_general(
        x_ref[...],
        w_ref[...],
        dimension_numbers=(((1,), (1,)), ((), ())),
        preferred_element_type=jnp.float32,
    ) + b_ref[...].astype(jnp.float32)

    # Ragged vocab: the last tile may extend past `vocab`; those columns hold garbage
    # (the weight/bias are NOT padded in the wrapper) and must not reach the max/sum-exp.
    # A large finite negative keeps exp() at exactly 0 with no NaN risk.  The masked
    # columns lie outside the (M, vocab) output arrays, so their stores are dropped.
    if vocab % tn != 0:
        cols = jax.lax.broadcasted_iota(jnp.int32, logits.shape, 1) + j * tn
        logits = jnp.where(cols < vocab, logits, jnp.float32(-1e30))

    logits_ref[...] = logits.astype(logits_ref.dtype)  # bf16 intermediate

    m_prev = m_sc[...]
    m_new = jnp.maximum(m_prev, jnp.max(logits, axis=-1, keepdims=True))
    l_sc[...] = l_sc[...] * jnp.exp(m_prev - m_new) + jnp.sum(
        jnp.exp(logits - m_new), axis=-1, keepdims=True
    )
    m_sc[...] = m_new

    @pl.when(j == pl.num_programs(1) - 1)
    def _():
        lse_ref[...] = m_sc[...] + jnp.log(l_sc[...])


def _normalize_kernel(logits_ref, lse_ref, o_ref):
    # log_softmax = logits - logsumexp, broadcast over the vocab (lane) axis.
    o_ref[...] = (logits_ref[...].astype(jnp.float32) - lse_ref[...]).astype(o_ref.dtype)


def masked_language_model(x, weight, bias, *, tm=512, tn=1024, tn_norm=2048,
                          out_dtype=jnp.float32, vmem_limit_bytes=None):
    """x: (batch, seq, hidden); weight: (vocab, hidden); bias: (vocab,).

    Returns log-probs of shape (batch, seq, vocab) in `out_dtype` (default f32).
    Pass x / weight already in bf16 to avoid a per-call cast pass over HBM.
    Defaults (tm=512, tn=1024) fit comfortably in VMEM for hidden <= 4096 on all
    generations (including v7x's 64 MiB VMEM).
    """
    batch, seq, hidden = x.shape
    vocab, hidden_w = weight.shape
    assert hidden_w == hidden
    M = batch * seq

    # --- tile selection ---------------------------------------------------------------
    tm = _pick_row_tile(M, tm)
    tn = max(128, min(_round_up(tn, 128), _round_up(vocab, 128)))
    tn2 = max(128, min(_round_up(tn_norm, 128), _round_up(vocab, 128)))
    n_row = _cdiv(M, tm)
    n_voc = _cdiv(vocab, tn)
    n_voc2 = _cdiv(vocab, tn2)

    # --- VMEM budget (always set explicitly; 32 MiB floor, 64 MiB cap = v7x physical) --
    if vmem_limit_bytes is None:
        p1 = 2 * (tm * hidden * 2 + tn * hidden * 2 + tn * 4 + tm * tn * 2 + tm * 4) \
            + 2 * tm * 4
        p2 = 2 * (tm * tn2 * 2 + tm * 4 + tm * tn2 * 4)
        vmem_limit_bytes = int(min(max(int(1.25 * max(p1, p2)) + (1 << 20), 32 << 20),
                                   64 << 20))

    # --- operand prep (no padding, no transpose; casts are no-ops if caller is bf16) ---
    x2 = x.reshape(M, hidden)
    if x2.dtype != jnp.bfloat16:
        x2 = x2.astype(jnp.bfloat16)
    w = weight if weight.dtype == jnp.bfloat16 else weight.astype(jnp.bfloat16)
    b = bias.reshape(1, vocab)
    if b.dtype != jnp.float32:
        b = b.astype(jnp.float32)

    # --- pass 1: bf16 logits tiles + per-row logsumexp (online across vocab tiles) -----
    kernel1 = functools.partial(_logits_lse_kernel, vocab=vocab, tn=tn)
    logits, lse = pl.pallas_call(
        kernel1,
        out_shape=(
            jax.ShapeDtypeStruct((M, vocab), jnp.bfloat16),
            jax.ShapeDtypeStruct((M, 1), jnp.float32),
        ),
        grid_spec=pltpu.PrefetchScalarGridSpec(
            num_scalar_prefetch=0,
            grid=(n_row, n_voc),
            in_specs=[
                pl.BlockSpec((tm, hidden), lambda i, j: (i, 0)),   # x row tile
                pl.BlockSpec((tn, hidden), lambda i, j: (j, 0)),   # weight vocab tile
                pl.BlockSpec((1, tn), lambda i, j: (0, j)),        # bias vocab tile
            ],
            out_specs=[
                pl.BlockSpec((tm, tn), lambda i, j: (i, j)),       # bf16 logits
                pl.BlockSpec((tm, 1), lambda i, j: (i, 0)),        # lse (resident over j)
            ],
            scratch_shapes=[
                pltpu.VMEM((tm, 1), jnp.float32),  # running max
                pltpu.VMEM((tm, 1), jnp.float32),  # running sum-exp
            ],
        ),
        compiler_params=pltpu.CompilerParams(
            dimension_semantics=("parallel", "arbitrary"),
            vmem_limit_bytes=vmem_limit_bytes,
        ),
    )(x2, w, b)

    # --- pass 2: normalize (logits - lse) with big lane-dense blocks --------------------
    logprobs = pl.pallas_call(
        _normalize_kernel,
        out_shape=jax.ShapeDtypeStruct((M, vocab), out_dtype),
        grid_spec=pltpu.PrefetchScalarGridSpec(
            num_scalar_prefetch=0,
            grid=(n_row, n_voc2),
            in_specs=[
                pl.BlockSpec((tm, tn2), lambda i, j: (i, j)),
                pl.BlockSpec((tm, 1), lambda i, j: (i, 0)),
            ],
            out_specs=pl.BlockSpec((tm, tn2), lambda i, j: (i, j)),
        ),
        compiler_params=pltpu.CompilerParams(
            dimension_semantics=("parallel", "parallel"),
            vmem_limit_bytes=vmem_limit_bytes,
        ),
    )(logits, lse)

    return logprobs.reshape(batch, seq, vocab)


if __name__ == "__main__":
    # Small shapes chosen so the multi-tile online-logsumexp, ragged-row and ragged-vocab
    # (in-kernel mask, no wrapper pad) paths are all exercised.
    batch, seq, hidden, vocab = 3, 7, 128, 1000

    key = jax.random.PRNGKey(0)
    kx, kw, kb = jax.random.split(key, 3)
    x = jax.random.normal(kx, (batch, seq, hidden), dtype=jnp.float32)
    # deterministic "nn.Linear(hidden, vocab)" parameters
    weight = jax.random.normal(kw, (vocab, hidden), dtype=jnp.float32) * 0.02
    bias = jax.random.normal(kb, (vocab,), dtype=jnp.float32) * 0.02

    # Store LM-head params / activations in bf16 once, outside the traced call
    # (avoids a per-call upcast/transpose HBM pass).
    weight_bf16 = weight.astype(jnp.bfloat16)
    x_bf16 = x.astype(jnp.bfloat16)

    fn = jax.jit(functools.partial(masked_language_model, tm=16, tn=512, tn_norm=512))
    out = jax.block_until_ready(fn(x_bf16, weight_bf16, bias))

    # pure-JAX f32 reference (tolerance loosened for the bf16 matmul + bf16 logits path)
    ref = jax.nn.log_softmax(jnp.einsum("bsh,vh->bsv", x, weight) + bias, axis=-1)
    assert out.shape == (batch, seq, vocab)
    max_err = float(jnp.max(jnp.abs(out - ref)))
    assert jnp.allclose(out, ref, atol=3e-2, rtol=3e-2), max_err

    print("KERNEL_OK")
</pallas_src>

<mosaic_0001>
module attributes {stable_mosaic.version = 11 : i64} {
  func.func @_normalize_kernel(%arg0: i32, %arg1: i32, %arg2: memref<16x512xbf16, #tpu.memory_space<vmem>>, %arg3: memref<16x1xf32, #tpu.memory_space<vmem>>, %arg4: memref<16x512xf32, #tpu.memory_space<vmem>>) attributes {dimension_semantics = [#tpu.dimension_semantics<parallel>, #tpu.dimension_semantics<parallel>], iteration_bounds = array<i64: 2, 2>, scalar_prefetch = 0 : i64, scratch_operands = 0 : i64, tpu.core_type = #tpu.core_type<tc>, window_params = [{transform_indices = @transform_0, window_bounds = array<i64: 16, 512>}, {transform_indices = @transform_1, window_bounds = array<i64: 16, 1>}, {transform_indices = @transform_2, window_bounds = array<i64: 16, 512>}]} {
    %c0 = arith.constant 0 : index
    %c0_0 = arith.constant 0 : index
    %0 = vector.load %arg2[%c0, %c0_0] : memref<16x512xbf16, #tpu.memory_space<vmem>>, vector<16x512xbf16>
    %1 = arith.extf %0 : vector<16x512xbf16> to vector<16x512xf32>
    %c0_1 = arith.constant 0 : index
    %c0_2 = arith.constant 0 : index
    %2 = vector.load %arg3[%c0_1, %c0_2] : memref<16x1xf32, #tpu.memory_space<vmem>>, vector<16x1xf32>
    %3 = vector.broadcast %2 : vector<16x1xf32> to vector<16x512xf32>
    %4 = arith.subf %1, %3 : vector<16x512xf32>
    %c0_3 = arith.constant 0 : index
    %c0_4 = arith.constant 0 : index
    %5 = vector.load %arg4[%c0_3, %c0_4] : memref<16x512xf32, #tpu.memory_space<vmem>>, vector<16x512xf32>
    tpu.vector_store %arg4[%c0_3, %c0_4], %4 {strides = array<i32>} : memref<16x512xf32, #tpu.memory_space<vmem>>, vector<16x512xf32>,
    return
  }
  func.func @transform_0(%arg0: i32, %arg1: i32) -> (i32, i32) {
    %c0_i32 = arith.constant 0 : i32
    return %arg0, %arg1 : i32, i32
  }
  func.func @transform_1(%arg0: i32, %arg1: i32) -> (i32, i32) {
    %c0_i32 = arith.constant 0 : i32
    %c0_i32_0 = arith.constant 0 : i32
    return %arg0, %c0_i32 : i32, i32
  }
  func.func @transform_2(%arg0: i32, %arg1: i32) -> (i32, i32) {
    %c0_i32 = arith.constant 0 : i32
    return %arg0, %arg1 : i32, i32
  }
}

module attributes {stable_mosaic.version = 11 : i64} {
  func.func @_logits_lse_kernel(%arg0: i32, %arg1: i32, %arg2: memref<16x128xbf16, #tpu.memory_space<vmem>>, %arg3: memref<512x128xbf16, #tpu.memory_space<vmem>>, %arg4: memref<1x512xf32, #tpu.memory_space<vmem>>, %arg5: memref<16x512xbf16, #tpu.memory_space<vmem>>, %arg6: memref<16x1xf32, #tpu.memory_space<vmem>>, %arg7: memref<16x1xf32, #tpu.memory_space<vmem>>, %arg8: memref<16x1xf32, #tpu.memory_space<vmem>>) attributes {dimension_semantics = [#tpu.dimension_semantics<parallel>, #tpu.dimension_semantics<arbitrary>], iteration_bounds = array<i64: 2, 2>, scalar_prefetch = 0 : i64, scratch_operands = 2 : i64, tpu.core_type = #tpu.core_type<tc>, window_params = [{transform_indices = @transform_0, window_bounds = array<i64: 16, 128>}, {transform_indices = @transform_1, window_bounds = array<i64: 512, 128>}, {transform_indices = @transform_2, window_bounds = array<i64: 1, 512>}, {transform_indices = @transform_3, window_bounds = array<i64: 16, 512>}, {transform_indices = @transform_4, window_bounds = array<i64: 16, 1>}]} {
    %c0_i32 = arith.constant 0 : i32
    %0 = arith.cmpi eq, %arg1, %c0_i32 : i32
    %1 = arith.extui %0 : i1 to i32
    %c0_i32_0 = arith.constant 0 : i32
    %2 = arith.cmpi ne, %1, %c0_i32_0 : i32
    scf.if %2 {
      %cst_20 = arith.constant 0xFF800000 : f32
      %38 = vector.broadcast %cst_20 : f32 to vector<16x1xf32>
      %c0_21 = arith.constant 0 : index
      %c0_22 = arith.constant 0 : index
      %39 = vector.load %arg7[%c0_21, %c0_22] : memref<16x1xf32, #tpu.memory_space<vmem>>, vector<16x1xf32>
      tpu.vector_store %arg7[%c0_21, %c0_22], %38 {strides = array<i32>} : memref<16x1xf32, #tpu.memory_space<vmem>>, vector<16x1xf32>,
      %cst_23 = arith.constant 0.000000e+00 : f32
      %40 = vector.broadcast %cst_23 : f32 to vector<16x1xf32>
      %c0_24 = arith.constant 0 : index
      %c0_25 = arith.constant 0 : index
      %41 = vector.load %arg8[%c0_24, %c0_25] : memref<16x1xf32, #tpu.memory_space<vmem>>, vector<16x1xf32>
      tpu.vector_store %arg8[%c0_24, %c0_25], %40 {strides = array<i32>} : memref<16x1xf32, #tpu.memory_space<vmem>>, vector<16x1xf32>,
    } else {
    }
    %c0 = arith.constant 0 : index
    %c0_1 = arith.constant 0 : index
    %3 = vector.load %arg2[%c0, %c0_1] : memref<16x128xbf16, #tpu.memory_space<vmem>>, vector<16x128xbf16>
    %c0_2 = arith.constant 0 : index
    %c0_3 = arith.constant 0 : index
    %4 = vector.load %arg3[%c0_2, %c0_3] : memref<512x128xbf16, #tpu.memory_space<vmem>>, vector<512x128xbf16>
    %cst = arith.constant dense<0.000000e+00> : vector<16x512xf32>
    %5 = tpu.matmul %3, %4, %cst {dimension_numbers = #tpu.dot_dimension_numbers<[1], [1], [0], [0], [0, 0, 1, 0], [], []>} : vector<16x128xbf16>, vector<512x128xbf16>, vector<16x512xf32> -> vector<16x512xf32>
    %c0_4 = arith.constant 0 : index
    %c0_5 = arith.constant 0 : index
    %6 = vector.load %arg4[%c0_4, %c0_5] : memref<1x512xf32, #tpu.memory_space<vmem>>, vector<1x512xf32>
    %7 = vector.broadcast %6 : vector<1x512xf32> to vector<16x512xf32>
    %8 = arith.addf %5, %7 : vector<16x512xf32>
    %9 = tpu.iota {dimensions = array<i32: 1>} : vector<16x512xi32>
    %c512_i32 = arith.constant 512 : i32
    %10 = arith.muli %arg1, %c512_i32 : i32
    %11 = vector.broadcast %10 : i32 to vector<16x512xi32>
    %12 = arith.addi %9, %11 : vector<16x512xi32>
    %c1000_i32 = arith.constant 1000 : i32
    %13 = vector.broadcast %c1000_i32 : i32 to vector<16x512xi32>
    %14 = arith.cmpi slt, %12, %13 : vector<16x512xi32>
    %cst_6 = arith.constant -1.000000e+30 : f32
    %15 = vector.broadcast %cst_6 : f32 to vector<16x512xf32>
    %16 = arith.select %14, %8, %15 : vector<16x512xi1>, vector<16x512xf32>
    %17 = arith.truncf %16 : vector<16x512xf32> to vector<16x512xbf16>
    %c0_7 = arith.constant 0 : index
    %c0_8 = arith.constant 0 : index
    %18 = vector.load %arg5[%c0_7, %c0_8] : memref<16x512xbf16, #tpu.memory_space<vmem>>, vector<16x512xbf16>
    tpu.vector_store %arg5[%c0_7, %c0_8], %17 {strides = array<i32>} : memref<16x512xbf16, #tpu.memory_space<vmem>>, vector<16x512xbf16>,
    %c0_9 = arith.constant 0 : index
    %c0_10 = arith.constant 0 : index
    %19 = vector.load %arg7[%c0_9, %c0_10] : memref<16x1xf32, #tpu.memory_space<vmem>>, vector<16x1xf32>
    %cst_11 = arith.constant dense<0xFF800000> : vector<16xf32>
    %20 = vector.multi_reduction <maximumf>, %16, %cst_11 [1] : vector<16x512xf32> to vector<16xf32>
    %21 = vector.shape_cast %20 : vector<16xf32> to vector<16x1xf32>
    %22 = arith.maximumf %19, %21 : vector<16x1xf32>
    %c0_12 = arith.constant 0 : index
    %c0_13 = arith.constant 0 : index
    %23 = vector.load %arg8[%c0_12, %c0_13] : memref<16x1xf32, #tpu.memory_space<vmem>>, vector<16x1xf32>
    %24 = arith.subf %19, %22 : vector<16x1xf32>
    %25 = math.exp %24 : vector<16x1xf32>
    %26 = arith.mulf %23, %25 : vector<16x1xf32>
    %27 = vector.broadcast %22 : vector<16x1xf32> to vector<16x512xf32>
    %28 = arith.subf %16, %27 : vector<16x512xf32>
    %29 = math.exp %28 : vector<16x512xf32>
    %cst_14 = arith.constant dense<0.000000e+00> : vector<16xf32>
    %30 = vector.multi_reduction <add>, %29, %cst_14 [1] : vector<16x512xf32> to vector<16xf32>
    %31 = vector.shape_cast %30 : vector<16xf32> to vector<16x1xf32>
    %32 = arith.addf %26, %31 : vector<16x1xf32>
    %c0_15 = arith.constant 0 : index
    %c0_16 = arith.constant 0 : index
    %33 = vector.load %arg8[%c0_15, %c0_16] : memref<16x1xf32, #tpu.memory_space<vmem>>, vector<16x1xf32>
    tpu.vector_store %arg8[%c0_15, %c0_16], %32 {strides = array<i32>} : memref<16x1xf32, #tpu.memory_space<vmem>>, vector<16x1xf32>,
    %c0_17 = arith.constant 0 : index
    %c0_18 = arith.constant 0 : index
    %34 = vector.load %arg7[%c0_17, %c0_18] : memref<16x1xf32, #tpu.memory_space<vmem>>, vector<16x1xf32>
    tpu.vector_store %arg7[%c0_17, %c0_18], %22 {strides = array<i32>} : memref<16x1xf32, #tpu.memory_space<vmem>>, vector<16x1xf32>,
    %c1_i32 = arith.constant 1 : i32
    %35 = arith.cmpi eq, %arg1, %c1_i32 : i32
    %36 = arith.extui %35 : i1 to i32
    %c0_i32_19 = arith.constant 0 : i32
    %37 = arith.cmpi ne, %36, %c0_i32_19 : i32
    scf.if %37 {
      %c0_20 = arith.constant 0 : index
      %c0_21 = arith.constant 0 : index
      %38 = vector.load %arg7[%c0_20, %c0_21] : memref<16x1xf32, #tpu.memory_space<vmem>>, vector<16x1xf32>
      %c0_22 = arith.constant 0 : index
      %c0_23 = arith.constant 0 : index
      %39 = vector.load %arg8[%c0_22, %c0_23] : memref<16x1xf32, #tpu.memory_space<vmem>>, vector<16x1xf32>
      %40 = math.log %39 : vector<16x1xf32>
      %41 = arith.addf %38, %40 : vector<16x1xf32>
      %c0_24 = arith.constant 0 : index
      %c0_25 = arith.constant 0 : index
      %42 = vector.load %arg6[%c0_24, %c0_25] : memref<16x1xf32, #tpu.memory_space<vmem>>, vector<16x1xf32>
      tpu.vector_store %arg6[%c0_24, %c0_25], %41 {strides = array<i32>} : memref<16x1xf32, #tpu.memory_space<vmem>>, vector<16x1xf32>,
    } else {
    }
    return
  }
  func.func @transform_0(%arg0: i32, %arg1: i32) -> (i32, i32) {
    %c0_i32 = arith.constant 0 : i32
    %c0_i32_0 = arith.constant 0 : i32
    return %arg0, %c0_i32 : i32, i32
  }
  func.func @transform_1(%arg0: i32, %arg1: i32) -> (i32, i32) {
    %c0_i32 = arith.constant 0 : i32
    %c0_i32_0 = arith.constant 0 : i32
    return %arg1, %c0_i32 : i32, i32
  }
  func.func @transform_2(%arg0: i32, %arg1: i32) -> (i32, i32) {
    %c0_i32 = arith.constant 0 : i32
    %c0_i32_0 = arith.constant 0 : i32
    return %c0_i32, %arg1 : i32, i32
  }
  func.func @transform_3(%arg0: i32, %arg1: i32) -> (i32, i32) {
    %c0_i32 = arith.constant 0 : i32
    return %arg0, %arg1 : i32, i32
  }
  func.func @transform_4(%arg0: i32, %arg1: i32) -> (i32, i32) {
    %c0_i32 = arith.constant 0 : i32
    %c0_i32_0 = arith.constant 0 : i32
    return %arg0, %c0_i32 : i32, i32
  }
}

</mosaic_0001>

<bundles_post_ra>
// kernel: masked_language_model.3
= control target key start
LH: loop header
LB: loop body
LE: loop exit
PB: predicated region body
PF: predicated region fallthrough
CT: control target
= control target key end

     0   :  { %s1012_s9 = smov 0   ;;  %s1014_s10 = smov 0   ;;  %s1249_s0 = inlined_call_operand.vmem [shape: bf16[21,1000], index: 0, kind: input, shape index: {}]   ;;  %s1250_s1 = inlined_call_operand.vmem [shape: f32[21,1], index: 1, kind: input, shape index: {}]   ;;  %s1251_s2 = inlined_call_operand.vmem [shape: f32[21,1000], index: 2, kind: output, shape index: {}]  }
   0x1   :  { %s1016_s11 = smov 0   ;;  %s1018_s12 = smov 0  }
   0x2   :  { %s1020_s13 = smov 0   ;;  %s1022_s14 = smov 0  }
   0x3   :  { %s1024_s15 = smov 0  }
   0x4 LB: > { %s21_s16 = sadd.s32 1, %s922_s13  ;;  %s24_s17 = sadd.s32 1, %s926_s14  ;;  %s930_s15 = sphi %s1024_s15, %s12_s15   ;;  %s926_s14 = sphi %s1022_s14, %s1266_s14   ;;  %s922_s13 = sphi %s1020_s13, %s1265_s13   ;;  %s918_s12 = sphi %s1018_s12, %s1264_s12   ;;  %s914_s11 = sphi %s1016_s11, %s1263_s11   ;;  %s910_s10 = sphi %s1014_s10, %s1262_s10   ;;  %s906_s9 = sphi %s1012_s9, %s1261_s9  }
   0x5   : > { %p22_p0 = scmp.ge.s32.totalorder %s21_s16, 2  ;;  %s571_s18 = sadd.s32 4294967295, %s930_s15  }
   0x6   : > { %p40_p1 = scmp.ne.s32.totalorder %s910_s10, %s906_s9  ;;  %p41_p2 = scmp.eq.s32.totalorder %s930_s15, 0 }
   0x7   : > { %s1268_s16 = smov (%p22_p0, %s21_s16), 0  ;;  %s1270_s17 = smov (!%p22_p0, %s24_s17), %s926_s14 }
   0x8   : > { %p26_p3 = scmp.ge.s32.totalorder %s1270_s17, 2  ;;  %p98_p4 = scmp.eq.s32.totalorder %s571_s18, 3 }
   0x9   : > { %s29_s19 = ssub.s32 %s922_s13, %s1268_s16  ;;  %p42_p5 = por %p41_p2, %p40_p1 }
   0xa   : > { %s1272_s17 = smov (%p26_p3, %s1270_s17), 0  ;;  %p1060_p6 = por %p98_p4, %p40_p1 }
   0xb   : > { %s28_s21 = ssub.s32 %s926_s14, %s1272_s17  ;;  %s33_s23 = sadd.s32 1, %s910_s10 }
   0xc   : > { %s30_s22 = sor.u32 %s29_s19, %s28_s21  ;;  %p574_p8 = scmp.ge.s32.totalorder %s930_s15, 4 }
   0xd   : > { %p31_p7 = scmp.eq.s32.totalorder %s30_s22, 0 }
   0xe   : > { %120 = sbr.rel (%p574_p8) target bundleno = 77 (0x4d), region = 16 }
   0xf   : > { %s1068_s24 = scalar_select %p31_p7, %s910_s10, %s33_s23  }
  0x15   : > { %123 = sbr.rel (!%p42_p5) target bundleno = 77 (0x4d), region = 20  ;;  %s125_s25 = sand.u32 (%p42_p5), 1, %s910_s10  }
  0x16   : > { %s576_s26 = sshll.u32 (%p42_p5), %s926_s14, 1  ;;  %s575_s27 = sshll.u32 (%p42_p5), %s125_s25, 5 }
  0x17   : > { %s577_s28 = sshll.u32 (%p42_p5), %s922_s13, 2  ;;  %s130_s29 = ssub.s32 (%p42_p5), 3, %s576_s26 }
  0x18   : > { %p131_p9 = scmp.lt.s32.totalorder (%p42_p5), %s130_s29, 2  ;;  %s619_s30 = sshll.u32 (%p42_p5), %s926_s14, 4 }
  0x19   : > { %s137_s3 = sadd.s32 (%p42_p5), %s619_s30, %s577_s28  ;;  %s1083_s18 = scalar_lea.vmem (%p42_p5), [#allocation2], %s575_s27  }
  0x1a   : > { %s582_s4 = sshll.u32 (%p42_p5), %s137_s3, 2 }
  0x1b   : > { %s1081_s8 = scalar_lea.vmem (%p42_p5), %s1249_s0, %s582_s4  }
  0x1c   : > { %s1274_s29 = smov (!%p131_p9, %s130_s29), 2 }
  0x1d   : > { %s618_s5 = sshll.u32 %s1274_s29, 8 }
  0x1e   : > { %p583_p10 = scmp.eq.s32.totalorder %s618_s5, 0 }
  0x1f   : > { %s1086_s19 = sshrl.u32 (!%p583_p10), %s1274_s29, 1 }
  0x20   : > { %142 = sbr.rel (%p583_p10) target bundleno = 77 (0x4d), region = 24  ;;  %p584_p11 = scmp.le.s32.totalorder (!%p583_p10), %s1086_s19, 0 }
  0x27   : > { %482 = sbr.rel (%p584_p11) target bundleno = 56 (0x38), region = 124  ;;  %s1253_s21 = smov (!%p584_p11), %s1083_s18 }
  0x28   : > { %s1254_s22 = smov (!%p584_p11), %s1081_s8  ;;  %s1095_s23 = smov (!%p584_p11), 0  }
  0x29   : > { %s1097_s25 = smov (!%p584_p11), 0  }
  0x2e LB: >> { %v155_v0 = vld [vmem:[%s938_s22] sm:$0xff]  ;;  %v159_v2 = vld [vmem:[%s938_s22 + $0x8] sm:$0xff]  ;;  %s163_s26 = sadd.s32 1, %s942_s23  ;;  %s149_s25 = sadd.s32 1, %s946_s25   ;;  %s946_s25 = sphi %s1097_s25, %s149_s25   ;;  %s942_s23 = sphi %s1095_s23, %s1255_s23   ;;  %s938_s22 = sphi %s1254_s22, %s168_s22   ;;  %s934_s21 = sphi %s1253_s21, %s169_s21  }
  0x2f   : >> { %v157_v1 = vld [vmem:[%s938_s22 + $0x20] sm:$0xff]  ;;  %156 = vst [vmem:[%s934_s21] sm:$0xff] %v155_v0  ;;  %160 = vst [vmem:[%s934_s21 + $0x8] sm:$0xff] %v159_v2  ;;  %v161_v3 = vld [vmem:[%s938_s22 + $0x28] sm:$0xff]  ;;  %p164_p12 = scmp.ge.s32.totalorder %s163_s26, %s1086_s19  ;;  %p148_p13 = scmp.ge.s32.totalorder %s149_s25, %s1086_s19 }
  0x30   : >> { %158 = vst [vmem:[%s934_s21 + $0x10] sm:$0xff] %v157_v1  ;;  %162 = vst [vmem:[%s934_s21 + $0x18] sm:$0xff] %v161_v3 }
  0x31   : >> { %s1276_s26 = smov (%p164_p12, %s163_s26), 0  ;;  %151 = sbr.rel (!%p148_p13) target bundleno = 46 (0x2e), region = 130 }
  0x32   : >> { %s585_s27 = sshll.u32 %s1276_s26, 6  ;;  %s586_s28 = sshll.u32 %s1276_s26, 5 }
  0x33   : >> { %s168_s22 = scalar_lea.vmem %s1081_s8, %s585_s27   ;;  %s169_s21 = scalar_lea.vmem %s1083_s18, %s586_s28 [#allocation2]  }
  0x34   : >> { %s1255_s23 = smov %s1276_s26 }
  0x38 PF: > { %s1116_s30 = sand.u32 1, %s1274_s29   ;;  %s620_s3 = sshll.u32 %s1086_s19, 6 }
  0x39   : > { %s1120_s4 = scalar_lea.vmem %s1081_s8, %s620_s3   ;;  %s621_s5 = sshll.u32 %s1086_s19, 5 }
  0x3a   : > { %s1124_s6 = scalar_lea.vmem %s1083_s18, %s621_s5 [#allocation2]   ;;  %p590_p0 = scmp.le.s32.totalorder %s1116_s30, 0 }
  0x3b   : > { %s948_s7 = smov (!%p590_p0), %s1124_s6   ;;  %s952_s21 = smov (!%p590_p0), %s1120_s4  }
  0x3c   : > { %496 = sbr.rel (%p590_p0) target bundleno = 77 (0x4d), region = 135  ;;  %s956_s22 = smov (!%p590_p0), 0  }
  0x3d   : > { %s960_s23 = smov (!%p590_p0), 0  }
  0x43 LB: >> { %v186_v4 = vld [vmem:[%s954_s21] sm:$0xff]  ;;  %v188_v5 = vld [vmem:[%s954_s21 + $0x8] sm:$0xff]  ;;  %s190_s29 = sadd.s32 1, %s958_s22  ;;  %s180_s23 = sadd.s32 1, %s962_s23   ;;  %s962_s23 = sphi %s960_s23, %s180_s23   ;;  %s958_s22 = sphi %s956_s22, %s957_s22   ;;  %s954_s21 = sphi %s952_s21, %s195_s21   ;;  %s950_s7 = sphi %s948_s7, %s196_s7  }
  0x44   : >> { %187 = vst [vmem:[%s950_s7] sm:$0xff] %v186_v4  ;;  %189 = vst [vmem:[%s950_s7 + $0x8] sm:$0xff] %v188_v5  ;;  %p191_p1 = scmp.ge.s32.totalorder %s190_s29, %s1116_s30  ;;  %p179_p2 = scmp.ge.s32.totalorder %s180_s23, %s1116_s30 }
  0x46   : >> { %s1278_s29 = smov (%p191_p1, %s190_s29), 0  ;;  %182 = sbr.rel (!%p179_p2) target bundleno = 67 (0x43), region = 141 }
  0x47   : >> { %s591_s8 = sshll.u32 %s1278_s29, 5  ;;  %s592_s18 = sshll.u32 %s1278_s29, 4 }
  0x48   : >> { %s195_s21 = scalar_lea.vmem %s1120_s4, %s591_s8   ;;  %s196_s7 = scalar_lea.vmem %s1124_s6, %s592_s18 [#allocation2]  }
  0x49   : >> { %s957_s22 = smov %s1278_s29  }
  0x4d PF: > { %p593_p3 = scmp.ge.s32.totalorder %s930_s15, 1  ;;  %p218_p4 = scmp.lt.s32.totalorder %s930_s15, 5 }
  0x4f   : > { %p219_p5 = pnand %p593_p3, %p218_p4 }
  0x50   : > { %s1136_s19 = sshll.u32 (!%p219_p5), %s918_s12, 1  ;;  %v996_v6 = vmov (!%p219_p5), 0   ;;  %s225_s3 = sand.u32 (!%p219_p5), 1, %s906_s9  }
  0x51   : > { %222 = sbr.rel (%p219_p5) target bundleno = 278 (0x116), region = 54  ;;  %811 = vset.pattern.permute.xlu0 (!%p219_p5), %v996_v6  ;;  %p266_p7 = scmp.lt.s32.totalorder (!%p219_p5), %s1136_s19, 2 }
  0x52   : > { %s594_s4 = sshll.u32 (!%p219_p5), %s225_s3, 5  ;;  %s595_s6 = sshll.u32 (!%p219_p5), %s225_s3, 6 }
  0x53   : > { %s227_s5 = scalar_lea.vmem (!%p219_p5), [#allocation2], %s594_s4  ;;  %s1144_s9 = scalar_lea.vmem (!%p219_p5), [#allocation3], %s595_s6  }
  0x54   : > { %v282_v9 = vld [vmem:[%s227_s5] sm:$0xff] (!%p219_p5)  ;;  %v283_v10 = vld [vmem:[%s227_s5 + $0x8] sm:$0xff] (!%p219_p5)  ;;  %v284_v15 = vld [vmem:[%s227_s5 + $0x10] sm:$0xff] (!%p219_p5) }
  0x55   : > { %v286_v11 = vunpack.c.l.bf16 (!%p219_p5), %v282_v9  ;;  %v287_v12 = vunpack.c.h.bf16 (!%p219_p5), %v282_v9  ;;  %v288_v13 = vunpack.c.l.bf16 (!%p219_p5), %v283_v10  ;;  %v289_v14 = vunpack.c.h.bf16 (!%p219_p5), %v283_v10  ;;  %v285_v16 = vld [vmem:[%s227_s5 + $0x18] sm:$0xff] (!%p219_p5) }
  0x56   : > { %v290_v18 = vunpack.c.l.bf16 (!%p219_p5), %v284_v15  ;;  %v291_v19 = vunpack.c.h.bf16 (!%p219_p5), %v284_v15  ;;  %v292_v20 = vunpack.c.l.bf16 (!%p219_p5), %v285_v16  ;;  %v293_v21 = vunpack.c.h.bf16 (!%p219_p5), %v285_v16 }
  0x58   : > { %s267_s25 = scalar_select %p266_p7, %s1136_s19, 2 }
  0x59   : > { %s600_s7 = sshll.u32 (%p1060_p6), %s914_s11, 2  ;;  %s331_s21 = ssub.s32 (%p1060_p6), 3, %s1136_s19 }
  0x5a   : > { %s597_s26 = sshll.u32 %s267_s25, 3  ;;  %p332_p8 = scmp.lt.s32.totalorder (%p1060_p6), %s331_s21, 2 }
  0x5b   : > { %s269_s30 = scalar_lea.vmem %s1250_s1, %s597_s26  ;;  %s623_s22 = sshll.u32 (%p1060_p6), %s918_s12, 4 }
  0x5c   : > { %v294_v7 = vld [vmem:[%s269_s30] sm:$0xff]  ;;  %v295_v8 = vld [vmem:[%s269_s30 + $0x8] sm:$0xff]  ;;  %s338_s23 = sadd.s32 (%p1060_p6), %s623_s22, %s600_s7 }
  0x5d   : > { %298 = vperm.xlu0 %811, %v294_v7   ;;  %s605_s29 = sshll.u32 (%p1060_p6), %s338_s23, 3 }
  0x5e   : > { %s1165_s26 = scalar_lea.vmem (%p1060_p6), %s1251_s2, %s605_s29  }
  0x61   : > { %303 = vperm.xlu0 %811, %v295_v8  }
  0xdc   : > { %v299_v17 = vpop.permute.xlu0 %298 }
  0xdd   : > { %v306_v22 = vsub.f32 %v286_v11, %v299_v17  ;;  %v307_v23 = vsub.f32 %v287_v12, %v299_v17  ;;  %v308_v24 = vsub.f32 %v288_v13, %v299_v17  ;;  %v309_v25 = vsub.f32 %v289_v14, %v299_v17 }
  0xde   : > { %328 = sbr.rel (!%p1060_p6) target bundleno = 278 (0x116), region = 62 }
  0xdf   : > { %314 = vst [vmem:[%s1144_s9] sm:$0xff] %v306_v22  ;;  %315 = vst [vmem:[%s1144_s9 + $0x8] sm:$0xff] %v307_v23 }
  0xe0   : > { %316 = vst [vmem:[%s1144_s9 + $0x10] sm:$0xff] %v308_v24  ;;  %317 = vst [vmem:[%s1144_s9 + $0x18] sm:$0xff] %v309_v25  ;;  %v304_v26 = vpop.permute.xlu0 %303 }
  0xe1   : > { %v310_v27 = vsub.f32 %v290_v18, %v304_v26  ;;  %v311_v28 = vsub.f32 %v291_v19, %v304_v26  ;;  %v312_v29 = vsub.f32 %v292_v20, %v304_v26  ;;  %v313_v30 = vsub.f32 %v293_v21, %v304_v26 }
  0xe3   : > { %318 = vst [vmem:[%s1144_s9 + $0x20] sm:$0xff] %v310_v27  ;;  %319 = vst [vmem:[%s1144_s9 + $0x28] sm:$0xff] %v311_v28 }
  0xe4   : > { %320 = vst [vmem:[%s1144_s9 + $0x30] sm:$0xff] %v312_v29  ;;  %321 = vst [vmem:[%s1144_s9 + $0x38] sm:$0xff] %v313_v30 }
  0xe5   : > { %s1280_s21 = smov (!%p332_p8, %s331_s21), 2 }
  0xe6   : > { %s622_s8 = sshll.u32 %s1280_s21, 9 }
  0xe7   : > { %p606_p9 = scmp.eq.s32.totalorder %s622_s8, 0 }
  0xe8   : > { %s1168_s20 = sshrl.u32 (!%p606_p9), %s1280_s21, 1 }
  0xe9   : > { %343 = sbr.rel (%p606_p9) target bundleno = 278 (0x116), region = 66  ;;  %p607_p6 = scmp.le.s32.totalorder (!%p606_p9), %s1168_s20, 0 }
  0xf0   : > { %510 = sbr.rel (%p607_p6) target bundleno = 257 (0x101), region = 146  ;;  %s1256_s11 = smov (!%p607_p6), %s1165_s26 }
  0xf1   : > { %s1257_s12 = smov (!%p607_p6), %s1144_s9  ;;  %s1177_s19 = smov (!%p607_p6), 0  }
  0xf2   : > { %s1179_s27 = smov (!%p607_p6), 0  }
  0xf7 LB: >> { %v356_v31 = vld [vmem:[%s970_s12] sm:$0xff]  ;;  %v360_v33 = vld [vmem:[%s970_s12 + $0x8] sm:$0xff]  ;;  %s372_s28 = sadd.s32 1, %s974_s19  ;;  %v364_v35 = vld [vmem:[%s970_s12 + $0x10] sm:$0xff]  ;;  %s350_s27 = sadd.s32 1, %s978_s27   ;;  %s978_s27 = sphi %s1179_s27, %s350_s27   ;;  %s974_s19 = sphi %s1177_s19, %s1258_s19   ;;  %s970_s12 = sphi %s1257_s12, %s377_s12   ;;  %s966_s11 = sphi %s1256_s11, %s378_s11  }
  0xf8   : >> { %v358_v32 = vld [vmem:[%s970_s12 + $0x20] sm:$0xff]  ;;  %357 = vst [vmem:[%s966_s11] sm:$0xff] %v356_v31  ;;  %361 = vst [vmem:[%s966_s11 + $0x8] sm:$0xff] %v360_v33  ;;  %v362_v34 = vld [vmem:[%s970_s12 + $0x28] sm:$0xff]  ;;  %p373_p10 = scmp.ge.s32.totalorder %s372_s28, %s1168_s20  ;;  %p349_p11 = scmp.ge.s32.totalorder %s350_s27, %s1168_s20 }
  0xf9   : >> { %359 = vst [vmem:[%s966_s11 + $0x40] sm:$0xff] %v358_v32  ;;  %v366_v36 = vld [vmem:[%s970_s12 + $0x30] sm:$0xff]  ;;  %363 = vst [vmem:[%s966_s11 + $0x48] sm:$0xff] %v362_v34  ;;  %v368_v37 = vld [vmem:[%s970_s12 + $0x18] sm:$0xff] }
  0xfa   : >> { %365 = vst [vmem:[%s966_s11 + $0x10] sm:$0xff] %v364_v35  ;;  %367 = vst [vmem:[%s966_s11 + $0x50] sm:$0xff] %v366_v36  ;;  %v370_v38 = vld [vmem:[%s970_s12 + $0x38] sm:$0xff]  ;;  %s1282_s28 = smov (%p373_p10, %s372_s28), 0  ;;  %352 = sbr.rel (!%p349_p11) target bundleno = 247 (0xf7), region = 152 }
  0xfb   : >> { %369 = vst [vmem:[%s966_s11 + $0x18] sm:$0xff] %v368_v37  ;;  %371 = vst [vmem:[%s966_s11 + $0x58] sm:$0xff] %v370_v38  ;;  %s608_s30 = sshll.u32 %s1282_s28, 6  ;;  %s609_s3 = sshll.u32 %s1282_s28, 7 }
  0xfc   : >> { %s377_s12 = scalar_lea.vmem %s1144_s9, %s608_s30 [#allocation3]   ;;  %s378_s11 = scalar_lea.vmem %s1165_s26, %s609_s3  }
  0xfd   : >> { %s1258_s19 = smov %s1282_s28 }
 0x101 PF: > { %s1201_s4 = sand.u32 1, %s1280_s21   ;;  %s624_s5 = sshll.u32 %s1168_s20, 6 }
 0x102   : > { %s1205_s6 = scalar_lea.vmem %s1144_s9, %s624_s5 [#allocation3]   ;;  %s625_s7 = sshll.u32 %s1168_s20, 7 }
 0x103   : > { %s1209_s22 = scalar_lea.vmem %s1165_s26, %s625_s7   ;;  %p613_p12 = scmp.le.s32.totalorder %s1201_s4, 0 }
 0x104   : > { %s1259_s23 = smov (!%p613_p12), %s1209_s22  ;;  %s1260_s29 = smov (!%p613_p12), %s1205_s6 }
 0x105   : > { %524 = sbr.rel (%p613_p12) target bundleno = 278 (0x116), region = 157  ;;  %s988_s8 = smov (!%p613_p12), 0  }
 0x106   : > { %s992_s18 = smov (!%p613_p12), 0  }
 0x10c LB: >> { %v395_v39 = vld [vmem:[%s986_s29] sm:$0xff]  ;;  %v397_v40 = vld [vmem:[%s986_s29 + $0x8] sm:$0xff]  ;;  %v399_v41 = vld [vmem:[%s986_s29 + $0x10] sm:$0xff]  ;;  %s403_s9 = sadd.s32 1, %s990_s8  ;;  %s389_s18 = sadd.s32 1, %s994_s18   ;;  %s994_s18 = sphi %s992_s18, %s389_s18   ;;  %s990_s8 = sphi %s988_s8, %s989_s8   ;;  %s986_s29 = sphi %s1260_s29, %s408_s29   ;;  %s982_s23 = sphi %s1259_s23, %s409_s23  }
 0x10d   : >> { %396 = vst [vmem:[%s982_s23] sm:$0xff] %v395_v39  ;;  %398 = vst [vmem:[%s982_s23 + $0x8] sm:$0xff] %v397_v40  ;;  %v401_v42 = vld [vmem:[%s986_s29 + $0x18] sm:$0xff]  ;;  %p404_p13 = scmp.ge.s32.totalorder %s403_s9, %s1201_s4  ;;  %p388_p0 = scmp.ge.s32.totalorder %s389_s18, %s1201_s4 }
 0x10e   : >> { %400 = vst [vmem:[%s982_s23 + $0x10] sm:$0xff] %v399_v41  ;;  %402 = vst [vmem:[%s982_s23 + $0x18] sm:$0xff] %v401_v42 }
 0x10f   : >> { %s1284_s9 = smov (%p404_p13, %s403_s9), 0  ;;  %391 = sbr.rel (!%p388_p0) target bundleno = 268 (0x10c), region = 163 }
 0x110   : >> { %s614_s21 = sshll.u32 %s1284_s9, 5  ;;  %s615_s25 = sshll.u32 %s1284_s9, 6 }
 0x111   : >> { %s408_s29 = scalar_lea.vmem %s1205_s6, %s614_s21 [#allocation3]   ;;  %s409_s23 = scalar_lea.vmem %s1209_s22, %s615_s25  }
 0x112   : >> { %s989_s8 = smov %s1284_s9  }
 0x116 PF: > { %s12_s15 = sadd.s32 1, %s930_s15   ;;  %s1261_s9 = smov %s910_s10 }
 0x117   : > { %p9_p1 = scmp.ge.s32.totalorder %s12_s15, 6   ;;  %s1262_s10 = smov %s1068_s24 }
 0x118   : > { %s1263_s11 = smov %s922_s13  ;;  %s1264_s12 = smov %s926_s14 }
 0x119   : > { %s1265_s13 = smov %s1268_s16  ;;  %s1266_s14 = smov %s1272_s17 }
 0x11a   :  { %11 = sbr.rel (!%p9_p1) target bundleno = 4 (0x4), region = 174 }

// kernel: masked_language_model.2
= control target key start
LH: loop header
LB: loop body
LE: loop exit
PB: predicated region body
PF: predicated region fallthrough
CT: control target
= control target key end

     0   :  { %10 = vsyncpa [#allocation5], 0  ;;  %s2342_s0 = inlined_call_operand.vmem [shape: bf16[21,128], index: 0, kind: input, shape index: {}]   ;;  %s2343_s1 = inlined_call_operand.hbm [shape: bf16[1000,128], index: 1, kind: input, shape index: {}]   ;;  %s2344_s2 = inlined_call_operand.vmem [shape: f32[1,1000], index: 2, kind: input, shape index: {}]   ;;  %s2345_s3 = inlined_call_operand.vmem [shape: bf16[21,1000], index: 3, kind: output, shape index: {0}]   ;;  %s2346_s4 = inlined_call_operand.vmem [shape: f32[21,1], index: 4, kind: output, shape index: {1}]  }
   0x1   :  { %12 = vsyncpa [#allocation5 + $0x1], 0  ;;  %s1966_s15 = smov 0   ;;  %s1968_s16 = smov 0  }
   0x2   :  { %s1970_s17 = smov 0   ;;  %s1972_s18 = smov 0  }
   0x3   :  { %s1974_s19 = smov 0   ;;  %s1976_s20 = smov 0  }
   0x4   :  { %s1978_s21 = smov 0   ;;  %s1980_s22 = smov 0  }
   0x5   :  { %s1982_s23 = smov 0   ;;  %s1984_s24 = smov 0  }
   0x6   :  { %s1986_s25 = smov 0   ;;  %s1988_s26 = smov 0  }
   0x7 LB: > { %2352 = sst [smem:[#allocation9_spill]] %s1849_s21  ;;  %s1249_s27 = sadd.s32 4294967295, %s1869_s26   ;;  %s1869_s26 = sphi %s1988_s26, %s18_s26   ;;  %s1865_s25 = sphi %s1986_s25, %s2371_s25   ;;  %s1861_s24 = sphi %s1984_s24, %s2370_s24   ;;  %s1857_s23 = sphi %s1982_s23, %s2369_s23   ;;  %s1853_s22 = sphi %s1980_s22, %s2368_s22   ;;  %s1849_s21 = sphi %s1978_s21, %s2367_s21   ;;  %s1845_s20 = sphi %s1976_s20, %s2377_s20   ;;  %s1841_s19 = sphi %s1974_s19, %s2376_s19   ;;  %s1837_s18 = sphi %s1972_s18, %s2375_s18   ;;  %s1833_s17 = sphi %s1970_s17, %s2374_s17   ;;  %s1829_s16 = sphi %s1968_s16, %s2373_s16   ;;  %s1825_s15 = sphi %s1966_s15, %s2372_s15  }
   0x8   : > { %2353 = sst [smem:[#allocation10_spill]] %s1861_s24  ;;  %s27_s28 = sadd.s32 1, %s1861_s24 }
   0x9   : > { %2354 = sst [smem:[#allocation11_spill]] %s1865_s25  ;;  %p28_p0 = scmp.ge.s32.totalorder %s27_s28, 2 }
   0xa   : > { %s30_s29 = sadd.s32 1, %s1865_s25  ;;  %s63_s30 = sadd.s32 1, %s1849_s21 }
   0xb   : > { %p70_p1 = scmp.ne.s32.totalorder %s1849_s21, %s1845_s20  ;;  %s2379_s28 = smov (%p28_p0, %s27_s28), 0 }
   0xc   : > { %2355 = sst [smem:[#allocation12_spill]] %s2379_s28  ;;  %s2381_s29 = smov (!%p28_p0, %s30_s29), %s1865_s25 }
   0xd   : > { %s60_s5 = ssub.s32 %s1861_s24, %s2379_s28  ;;  %p71_p2 = scmp.eq.s32.totalorder %s1869_s26, 0 }
   0xe   : > { %p32_p3 = scmp.ge.s32.totalorder %s2381_s29, 2  ;;  %p61_p4 = scmp.eq.s32.totalorder %s60_s5, 0 }
   0xf   : > { %p2036_p5 = por %p71_p2, %p70_p1  ;;  %p76_p6 = scmp.ne.s32.totalorder %s1845_s20, %s1841_s19 }
  0x10   : > { %s2383_s29 = smov (%p32_p3, %s2381_s29), 0  ;;  %p77_p7 = scmp.eq.s32.totalorder %s1249_s27, 0 }
  0x11   : > { %2357 = sst [smem:[#allocation13_spill]] %s2383_s29  ;;  %s112_s8 = ssub.s32 %s1865_s25, %s2383_s29 }
  0x12   : > { %s2044_s7 = scalar_select %p61_p4, %s1849_s21, %s63_s30  }
  0x13   : > { %s114_s9 = sor.u32 %s112_s8, %s60_s5  ;;  %s117_s10 = sadd.s32 1, %s1837_s18 }
  0x14   : > { %2358 = sst [smem:[#allocation14_spill]] %s2044_s7  ;;  %p2049_p8 = por %p77_p7, %p76_p6 }
  0x15   : > { %p115_p9 = scmp.eq.s32.totalorder %s114_s9, 0  ;;  %p127_p10 = scmp.ne.s32.totalorder %s1837_s18, %s1833_s17 }
  0x16   : > { %p128_p11 = scmp.eq.s32.totalorder %s1249_s27, 3  ;;  %p141_p13 = scmp.eq.s32.totalorder %s112_s8, 0 }
  0x17   : > { %s2056_s12 = scalar_select %p115_p9, %s1837_s18, %s117_s10  }
  0x18   : > { %p2058_p12 = por %p128_p11, %p127_p10  ;;  %s143_s14 = sadd.s32 1, %s1829_s16 }
  0x19   : > { %p153_p0 = scmp.ne.s32.totalorder %s1829_s16, %s1825_s15  ;;  %p1252_p2 = scmp.ge.s32.totalorder %s1869_s26, 4 }
  0x1a   : > { %s2066_s19 = scalar_select %p141_p13, %s1829_s16, %s143_s14  }
  0x1b   : > { %p2068_p1 = por %p153_p0, %p128_p11  ;;  %176 = sbr.rel (%p1252_p2) target bundleno = 69 (0x45), region = 16 }
  0x1d   : > { %s2361_s30 = scalar_select %p2068_p1, 1, 0 }
  0x22   : > { %196 = sbr.rel (!%p2036_p5) target bundleno = 69 (0x45), region = 24  ;;  %s197_s27 = sand.u32 (%p2036_p5), 1, %s1849_s21  }
  0x23   : > { %s1254_s5 = sshll.u32 (%p2036_p5), %s1861_s24, 6  ;;  %s1253_s9 = sshll.u32 (%p2036_p5), %s197_s27, 8 }
  0x24   : > { %s203_s8 = ssub.s32 (%p2036_p5), 125, %s1254_s5  ;;  %s2080_s29 = scalar_lea.sflag (%p2036_p5), [#allocation5], %s197_s27 }
  0x25   : > { %p204_p3 = scmp.lt.s32.totalorder (%p2036_p5), %s203_s8, 64  ;;  %s201_s28 = scalar_lea.vmem (%p2036_p5), [#allocation4], %s1253_s9 }
  0x29   : > { %s2385_s8 = smov (!%p204_p3, %s203_s8), 64 }
  0x2a   : > { %s2077_s10 = sshll.u32 %s2385_s8, 6 }
  0x2b   : > { %s208_s14 = ssub.s32 4096, %s2077_s10 }
  0x2c   : > { %209 = vsyncadd %s2080_s29, %s208_s14  ;;  %p1256_p4 = scmp.ne.s32.totalorder %s2077_s10, 0  ;;  %s1342_s6 = sshll.u32 %s1861_s24, 12 }
  0x2d   : > { %s2088_s5 = scalar_lea.hbm %s2343_s1, %s1342_s6  ;;  %s214_s27 = sshll.u32 %s201_s28, 4  ;;  %s2090_s27 = int_to_ptr.vmem [resolvable:$true] %s214_s27 }
  0x2e   : > { %s1679_s9 = scalar_lea.hbm %s2088_s5, %s2077_s10  ;;  %s1683_s24 = scalar_lea.hbm %s2343_s1, 8000 }
  0x2f   : > { %p1680_p5 = scmp.ne.s32.totalorder %s2088_s5, %s1679_s9  ;;  %p1684_p9 = scmp.lt.u32.totalorder %s2088_s5, %s2343_s1 }
  0x30   : > { %p1685_p10 = scmp.lt.u32.totalorder %s1683_s24, %s1679_s9  ;;  %p1687_p13 = scmp.lt.u32.totalorder %s1679_s9, %s2088_s5 }
  0x31   : > { %p1681_p6 = pnand %p1680_p5, %p1256_p4 }
  0x32   : > { %p1686_p11 = por %p1685_p10, %p1684_p9 }
  0x33   : > { %p1682_p7 = pneg %p1681_p6 }
  0x34   : > { %p1688_p0 = por %p1687_p13, %p1686_p11 }
  0x36   : > { %p1689_p2 = pnand %p1688_p0, %p1682_p7 }
  0x38   : > { %1692 = shalt.err (!%p1689_p2)
}
  0x39   : > { %s1693_s28 = scalar_lea.vmem %s2090_s27, %s2077_s10  ;;  %s1935_s7 = smov [#allocation4]  }
  0x3a   : > { %p1694_p3 = scmp.ne.s32.totalorder %s2090_s27, %s1693_s28  ;;  %s1697_s6 = sshll.u32 %s1935_s7, 4  ;;  %s1698_s6 = int_to_ptr.vmem [resolvable:$false] %s1697_s6 }
  0x3b   : > { %s1699_s21 = scalar_lea.vmem %s1698_s6, 8192  ;;  %p1700_p1 = scmp.lt.s32.totalorder %s2090_s27, %s1698_s6 }
  0x3c   : > { %p1695_p5 = pnand %p1694_p3, %p1256_p4  ;;  %p1701_p9 = scmp.lt.s32.totalorder %s1699_s21, %s1693_s28 }
  0x3e   : > { %p1696_p6 = pneg %p1695_p5  ;;  %p1702_p10 = por %p1701_p9, %p1700_p1 }
  0x40   : > { %p1703_p11 = pnand %p1702_p10, %p1696_p6 }
  0x42   : > { %1706 = shalt.err (!%p1703_p11)
}
  0x43   : > { %s1936_s24 = smov 64   ;;  %s1937_s9 = smov 4  }
  0x44   : > { %220 = dma.hbm_to_vmem [thread:$0]  (%p1256_p4), %s2088_s5, %s2077_s10, %s2090_s27, %s2080_s29, %s1936_s24, %s1936_s24, %s1937_s9  }
  0x45 PF: > { %p1260_p7 = scmp.ge.s32.totalorder %s1869_s26, 1  ;;  %p230_p13 = scmp.lt.s32.totalorder %s1869_s26, 5 }
  0x47   : > { %p231_p0 = pnand %p1260_p7, %p230_p13 }
  0x48   : > { %s236_s8 = sand.u32 (!%p231_p0), 1, %s1845_s20  }
  0x49   : > { %234 = sbr.rel (%p231_p0) target bundleno = 965 (0x3c5), region = 32  ;;  %s1261_s14 = sshll.u32 (!%p231_p0), %s236_s8, 8 }
  0x4a   : > { %s237_s25 = scalar_lea.sflag (!%p231_p0), [#allocation5], %s236_s8  ;;  %s2120_s28 = scalar_lea.vmem (!%p231_p0), [#allocation4], %s1261_s14 }
  0x50   : > { %1820 = dma.done.wait (%p2049_p8), %s237_s25, 4096  }
  0x51   : > { %1822 = vsyncadd (%p2049_p8), %s237_s25, 4294963200  ;;  %s272_s29 = sand.u32 1, %s1833_s17   ;;  %s278_s10 = sand.u32 1, %s1825_s15  }
  0x52   : > { %s1262_s5 = sshll.u32 %s272_s29, 5  ;;  %s1263_s27 = sshll.u32 %s278_s10, 4 }
  0x53   : > { %s2129_s7 = sshll.u32 %s1857_s23, 1  ;;  %s2132_s6 = sshll.u32 %s1853_s22, 2 }
  0x54   : > { %p286_p1 = scmp.lt.s32.totalorder %s2129_s7, 2  ;;  %p301_p4 = scmp.lt.s32.totalorder %s2132_s6, 7 }
  0x55   : > { %s2149_s29 = scalar_lea.vmem [#allocation6], %s1262_s5   ;;  %s2151_s10 = scalar_lea.vmem [#allocation7], %s1263_s27  }
  0x56   : > { %s287_s11 = scalar_select %p286_p1, %s2129_s7, 2 }
  0x57   : > { %s2138_s21 = scalar_select %p301_p4, %s2132_s6, 7 }
  0x58   : > { %s1265_s24 = sshll.u32 %s287_s11, 2  ;;  %p1267_p8 = scmp.ne.s32.totalorder %s1853_s22, 0 }
  0x59   : > { %s2143_s15 = scalar_lea.vmem %s2342_s0, %s1265_s24  ;;  %s303_s25 = scalar_lea.vmem %s2344_s2, %s2138_s21  ;;  %vm322_vm0 = vcmask (!%p1267_p8), 7168   ;;  %v1938_v0 = vmov (!%p1267_p8), -inf   ;;  %v1939_v1 = vmov (!%p1267_p8), 0.0  }
  0x5a   : > { %321 = sbr.rel (%p1267_p8) target bundleno = 97 (0x61), region = 40  ;;  %323 = vst.msk [vmem:[#allocation2] sm:$0xff] (!%p1267_p8), %vm322_vm0, %v1938_v0  ;;  %324 = vst.msk [vmem:[#allocation2 + $0x8] sm:$0xff] (!%p1267_p8), %vm322_vm0, %v1938_v0 }
  0x5b   : > { %325 = vst.msk [vmem:[#allocation3] sm:$0xff] (!%p1267_p8), %vm322_vm0, %v1939_v1  ;;  %326 = vst.msk [vmem:[#allocation3 + $0x8] sm:$0xff] (!%p1267_p8), %vm322_vm0, %v1939_v1 }
  0x61 PF: > { %v1622_v2 = vld [vmem:[%s2120_s28 + $0x40] sm:$0xff]   ;;  %v1626_v6 = vld [vmem:[%s2120_s28 + $0x48] sm:$0xff]   ;;  %v1630_v10 = vld [vmem:[%s2120_s28 + $0x50] sm:$0xff]   ;;  %v395_v35 = vlaneseq  ;;  %s1301_s5 = sshll.u32 %s1853_s22, 9  ;;  %vm820_vm5 = vcmask 7168   ;;  %p1306_p2 = scmp.ne.s32.totalorder %s1853_s22, 1 }
  0x62   : > { %v1623_v3 = vld [vmem:[%s2120_s28 + $0xc0] sm:$0xff]   ;;  %1354 = vmatprep.subr.bf16.mxu0 %v1622_v2  ;;  %v1627_v7 = vld [vmem:[%s2120_s28 + $0xc8] sm:$0xff]   ;;  %v1631_v11 = vld [vmem:[%s2120_s28 + $0xd0] sm:$0xff]   ;;  %v705_v39 = vstv %s1301_s5 }
  0x63   : > { %v1624_v4 = vld [vmem:[%s2120_s28] sm:$0xff]   ;;  %1372 = vmatprep.subr.bf16.mxu1 %v1623_v3  ;;  %v1628_v8 = vld [vmem:[%s2120_s28 + $0x8] sm:$0xff]   ;;  %v1632_v12 = vld [vmem:[%s2120_s28 + $0x10] sm:$0xff]   ;;  %v396_v36 = vshrl.u32 %v395_v35, 7  ;;  %v700_v37 = vand.u32 127, %v395_v35 }
  0x64   : > { %v1625_v5 = vld [vmem:[%s2120_s28 + $0x80] sm:$0xff]   ;;  %1355 = vmatpush3.bf16.xpose.msra.mxu0 %v1624_v4  ;;  %v1629_v9 = vld [vmem:[%s2120_s28 + $0x88] sm:$0xff]   ;;  %v1633_v13 = vld [vmem:[%s2120_s28 + $0x90] sm:$0xff]  }
  0x65   : > { %1373 = vmatpush3.bf16.xpose.msra.mxu1 %v1625_v5  ;;  %1356 = vmatprep.subr.bf16.mxu0 %v1626_v6  ;;  %v1634_v14 = vld [vmem:[%s2120_s28 + $0x58] sm:$0xff]   ;;  %v1638_v18 = vld [vmem:[%s2120_s28 + $0x60] sm:$0xff]   ;;  %v1642_v23 = vld [vmem:[%s2120_s28 + $0x68] sm:$0xff]   ;;  %v397_v38 = vsub.s32 0, %v396_v36  ;;  %v702_v40 = vadd.s32 256, %v700_v37  ;;  %v701_v41 = vadd.s32 128, %v700_v37  ;;  %v706_v47 = vadd.s32 %v705_v39, %v700_v37 }
  0x66   : > { %1374 = vmatprep.subr.bf16.mxu1 %v1627_v7  ;;  %v1635_v15 = vld [vmem:[%s2120_s28 + $0xd8] sm:$0xff]   ;;  %v1639_v19 = vld [vmem:[%s2120_s28 + $0xe0] sm:$0xff]   ;;  %v1643_v24 = vld [vmem:[%s2120_s28 + $0xe8] sm:$0xff]   ;;  %v405_v43 = vsub.s32 2, %v396_v36  ;;  %v401_v44 = vsub.s32 1, %v396_v36  ;;  %v703_v45 = vadd.s32 384, %v700_v37 }
  0x67   : > { %v1636_v16 = vld [vmem:[%s2120_s28 + $0x18] sm:$0xff]   ;;  %v1640_v20 = vld [vmem:[%s2120_s28 + $0x20] sm:$0xff]   ;;  %v1644_v25 = vld [vmem:[%s2120_s28 + $0x28] sm:$0xff]   ;;  %v409_v46 = vsub.s32 3, %v396_v36  ;;  %v708_v49 = vadd.s32 %v705_v39, %v702_v40  ;;  %v707_v50 = vadd.s32 %v705_v39, %v701_v41  ;;  %vm710_vm1 = vcmp.lt.s32.totalorder %v706_v47, 1000 }
  0x68   : > { %v1637_v17 = vld [vmem:[%s2120_s28 + $0x98] sm:$0xff]   ;;  %v1654_v21 = vld [vmem:[%s2143_s15] sm:$0xff]   ;;  %v1645_v26 = vld [vmem:[%s2120_s28 + $0xa8] sm:$0xff]   ;;  %v709_v53 = vadd.s32 %v705_v39, %v703_v45 }
  0x69   : > { %v1641_v22 = vld [vmem:[%s2120_s28 + $0xa0] sm:$0xff]   ;;  %1370 = vmatprep.mubr.bf16.mxu0 %v1654_v21  ;;  %1388 = vmatprep.mubr.bf16.mxu1 %v1654_v21  ;;  %v1646_v27 = vld [vmem:[%s2120_s28 + $0x70] sm:$0xff]   ;;  %v1650_v31 = vld [vmem:[%s2120_s28 + $0x78] sm:$0xff]   ;;  %vm712_vm2 = vcmp.lt.s32.totalorder %v708_v49, 1000  ;;  %vm711_vm3 = vcmp.lt.s32.totalorder %v707_v50, 1000 }
  0x6a   : > { %v1647_v28 = vld [vmem:[%s2120_s28 + $0xf0] sm:$0xff]   ;;  %v1651_v32 = vld [vmem:[%s2120_s28 + $0xf8] sm:$0xff]   ;;  %v393_v42 = vld [vmem:[%s303_s25] sm:$0xf]  ;;  %vm713_vm4 = vcmp.lt.s32.totalorder %v709_v53, 1000 }
  0x6b   : > { %v1648_v29 = vld [vmem:[%s2120_s28 + $0x30] sm:$0xff]   ;;  %v1652_v33 = vld [vmem:[%s2120_s28 + $0x38] sm:$0xff]   ;;  %v398_v48 = vrot.slane %v393_v42, %v397_v38  ;;  %v406_v51 = vrot.slane %v393_v42, %v405_v43  ;;  %v402_v52 = vrot.slane %v393_v42, %v401_v44  ;;  %v410_v54 = vrot.slane %v393_v42, %v409_v46 }
  0x6c   : > { %1357 = vmatpush3.bf16.xpose.msra.mxu0 %v1628_v8  ;;  %v1649_v30 = vld [vmem:[%s2120_s28 + $0xb0] sm:$0xff]   ;;  %v1653_v34 = vld [vmem:[%s2120_s28 + $0xb8] sm:$0xff]  }
  0x6d   : > { %1375 = vmatpush3.bf16.xpose.msra.mxu1 %v1629_v9  ;;  %1358 = vmatprep.subr.bf16.mxu0 %v1630_v10 }
  0x6e   : > { %1376 = vmatprep.subr.bf16.mxu1 %v1631_v11 }
  0x74   : > { %1359 = vmatpush3.bf16.xpose.msra.mxu0 %v1632_v12 }
  0x75   : > { %1377 = vmatpush3.bf16.xpose.msra.mxu1 %v1633_v13  ;;  %1360 = vmatprep.subr.bf16.mxu0 %v1634_v14 }
  0x76   : > { %1378 = vmatprep.subr.bf16.mxu1 %v1635_v15 }
  0x7c   : > { %1361 = vmatpush3.bf16.xpose.msra.mxu0 %v1636_v16 }
  0x7d   : > { %1379 = vmatpush3.bf16.xpose.msra.mxu1 %v1637_v17  ;;  %1362 = vmatprep.subr.bf16.mxu0 %v1638_v18 }
  0x7e   : > { %1380 = vmatprep.subr.bf16.mxu1 %v1639_v19 }
  0x84   : > { %1363 = vmatpush3.bf16.xpose.msra.mxu0 %v1640_v20 }
  0x85   : > { %1381 = vmatpush3.bf16.xpose.msra.mxu1 %v1641_v22  ;;  %1364 = vmatprep.subr.bf16.mxu0 %v1642_v23 }
  0x86   : > { %1382 = vmatprep.subr.bf16.mxu1 %v1643_v24 }
  0x8c   : > { %1365 = vmatpush3.bf16.xpose.msra.mxu0 %v1644_v25  ;;  %v1940_v25 = vmov 0  }
  0x8d   : > { %1383 = vmatpush3.bf16.xpose.msra.mxu1 %v1645_v26  ;;  %1366 = vmatprep.subr.bf16.mxu0 %v1646_v27  ;;  %v750_v26 = vld [vmem:[#allocation2] sm:$0xff] }
  0x8e   : > { %1384 = vmatprep.subr.bf16.mxu1 %v1647_v28  ;;  %1620 = vset.pattern.permute.xlu1 %v1940_v25 }
  0x8f   : > { %1621 = vset.pattern.permute.xlu0 %v1940_v25 }
  0x94   : > { %1367 = vmatpush3.bf16.xpose.msra.mxu0 %v1648_v29  ;;  %v751_v29 = vld [vmem:[#allocation2 + $0x8] sm:$0xff] }
  0x95   : > { %1385 = vmatpush3.bf16.xpose.msra.mxu1 %v1649_v30  ;;  %1368 = vmatprep.subr.bf16.mxu0 %v1650_v31 }
  0x96   : > { %1386 = vmatprep.subr.bf16.mxu1 %v1651_v32 }
  0x9c   : > { %1369 = vmatpush3.bf16.xpose.msra.mxu0 %v1652_v33 }
  0x9d   : > { %1387 = vmatpush3.bf16.xpose.msra.mxu1 %v1653_v34 }
  0xa3   : > { %1371 = vmatmul.mubr.bf16.vlgmr.msra.gmra.mrb[0].mxu0 %v1654_v21 }
  0xa4   : > { %1389 = vmatmul.mubr.bf16.vlgmr.msra.gmra.mrb[0].mxu1 %v1654_v21 }
 0x176   : > { %v647_v55 = vpop.f32.mrb[0].mxu0 }
 0x177   : > { %v648_v56 = vadd.f32 %v647_v55, %v398_v48  ;;  %v690_v57 = vpop.f32.mrb[0].mxu1  ;;  %v649_v58 = vpop.f32.mrb[1].mxu0 }
 0x178   : > { %v691_v59 = vadd.f32 %v690_v57, %v406_v51  ;;  %v650_v60 = vadd.f32 %v649_v58, %v402_v52  ;;  %v692_v61 = vpop.f32.mrb[1].mxu1  ;;  %v651_v62 = vpop.f32.mrb[2].mxu0 }
 0x179   : > { %v714_v63 = vsel %vm710_vm1, %v648_v56, -1e+30  ;;  %v693_v0 = vadd.f32 %v692_v61, %v410_v54  ;;  %v652_v1 = vadd.f32 %v651_v62, %v398_v48  ;;  %v694_v2 = vpop.f32.mrb[2].mxu1  ;;  %v653_v3 = vpop.f32.mrb[3].mxu0 }
 0x17a   : > { %v716_v4 = vsel %vm712_vm2, %v691_v59, -1e+30  ;;  %v715_v5 = vsel %vm711_vm3, %v650_v60, -1e+30  ;;  %v695_v6 = vadd.f32 %v694_v2, %v406_v51  ;;  %v654_v7 = vadd.f32 %v653_v3, %v402_v52  ;;  %v696_v8 = vpop.f32.mrb[3].mxu1 }
 0x17b   : > { %v1343_v9 = vpack.c.bf16 %v715_v5, %v714_v63  ;;  %v717_v10 = vsel %vm713_vm4, %v693_v0, -1e+30  ;;  %v718_v11 = vsel %vm710_vm1, %v652_v1, -1e+30  ;;  %v697_v12 = vadd.f32 %v696_v8, %v410_v54 }
 0x17c   : > { %v1344_v13 = vpack.c.bf16 %v717_v10, %v716_v4  ;;  %v720_v14 = vsel %vm712_vm2, %v695_v6, -1e+30  ;;  %v719_v15 = vsel %vm711_vm3, %v654_v7, -1e+30  ;;  %v752_v16 = vmax.f32 %v714_v63, %v716_v4 }
 0x17d   : > { %746 = vst [vmem:[%s2149_s29] sm:$0xff] %v1343_v9  ;;  %v1345_v17 = vpack.c.bf16 %v719_v15, %v718_v11  ;;  %v721_v18 = vsel %vm713_vm4, %v697_v12, -1e+30  ;;  %v753_v19 = vmax.f32 %v715_v5, %v717_v10  ;;  %v757_v22 = vmax.f32 %v718_v11, %v720_v14  ;;  %v765_v9 = vld [vmem:[#allocation3 + $0x8] sm:$0xff] }
 0x17e   : > { %747 = vst [vmem:[%s2149_s29 + $0x8] sm:$0xff] %v1344_v13  ;;  %v1346_v20 = vpack.c.bf16 %v721_v18, %v720_v14  ;;  %v758_v23 = vmax.f32 %v719_v15, %v721_v18 }
 0x17f   : > { %748 = vst [vmem:[%s2149_s29 + $0x10] sm:$0xff] %v1345_v17  ;;  %v754_v21 = vmax.f32 %v752_v16, %v753_v19 }
 0x180   : > { %749 = vst [vmem:[%s2149_s29 + $0x18] sm:$0xff] %v1346_v20  ;;  %v759_v24 = vmax.f32 %v757_v22, %v758_v23 }
 0x181   : > { %755 = vmax.xlane.f32.xlu0 %v754_v21 }
 0x185   : > { %760 = vmax.xlane.f32.xlu0 %v759_v24 }
 0x20e   : > { %v756_v27 = vpop.xlane.xlu0 %755 }
 0x20f   : > { %v762_v28 = vmax.f32 %v750_v26, %v756_v27 }
 0x211   : > { %v766_v30 = vsub.f32 %v750_v26, %v762_v28  ;;  %823 = vst.msk [vmem:[#allocation2] sm:$0xff] %vm820_vm5, %v762_v28  ;;  %776 = vperm.xlu1 %1620, %v762_v28  }
 0x212   : > { %v761_v31 = vpop.xlane.xlu0 %760 }
 0x213   : > { %v763_v32 = vmax.f32 %v751_v29, %v761_v31  ;;  %v768_v2 = vmul.f32 1.442695, %v766_v30 }
 0x215   : > { %v767_v33 = vsub.f32 %v751_v29, %v763_v32  ;;  %824 = vst.msk [vmem:[#allocation2 + $0x8] sm:$0xff] %vm820_vm5, %v763_v32  ;;  %781 = vperm.xlu1 %1620, %v763_v32  }
 0x217   : > { %v770_v3 = vmul.f32 1.442695, %v767_v33 }
 0x218   : > { %v829_v17 = vld [vmem:[#allocation2] sm:$0xff] (!%p1306_p2) }
 0x21c   : > { %v830_v20 = vld [vmem:[#allocation2 + $0x8] sm:$0xff] (!%p1306_p2) }
 0x290   : > { %v777_v34 = vpop.permute.xlu1 %776 }
 0x291   : > { %v784_v35 = vsub.f32 %v714_v63, %v777_v34  ;;  %v785_v36 = vsub.f32 %v715_v5, %v777_v34  ;;  %v786_v37 = vsub.f32 %v716_v4, %v777_v34  ;;  %v787_v38 = vsub.f32 %v717_v10, %v777_v34  ;;  %v764_v5 = vld [vmem:[#allocation3] sm:$0xff] }
 0x293   : > { %v792_v39 = vmul.f32 1.442695, %v784_v35  ;;  %v794_v40 = vmul.f32 1.442695, %v785_v36  ;;  %v796_v41 = vmul.f32 1.442695, %v786_v37 }
 0x294   : > { %v798_v42 = vmul.f32 1.442695, %v787_v38  ;;  %v782_v43 = vpop.permute.xlu1 %781 }
 0x295   : > { %1655 = vpow2.f32 %v792_v39  ;;  %v788_v44 = vsub.f32 %v718_v11, %v782_v43  ;;  %v789_v45 = vsub.f32 %v719_v15, %v782_v43  ;;  %v790_v46 = vsub.f32 %v720_v14, %v782_v43 }
 0x296   : > { %1657 = vpow2.f32 %v794_v40  ;;  %v791_v47 = vsub.f32 %v721_v18, %v782_v43 }
 0x297   : > { %1659 = vpow2.f32 %v796_v41  ;;  %v800_v48 = vmul.f32 1.442695, %v788_v44  ;;  %v802_v49 = vmul.f32 1.442695, %v789_v45  ;;  %v804_v50 = vmul.f32 1.442695, %v790_v46 }
 0x298   : > { %1661 = vpow2.f32 %v798_v42  ;;  %v806_v51 = vmul.f32 1.442695, %v791_v47 }
 0x299   : > { %1663 = vpow2.f32 %v800_v48 }
 0x29a   : > { %1665 = vpow2.f32 %v802_v49 }
 0x29b   : > { %1667 = vpow2.f32 %v804_v50 }
 0x29c   : > { %1669 = vpow2.f32 %v806_v51 }
 0x29d   : > { %1671 = vpow2.f32 %v768_v2 }
 0x29e   : > { %1673 = vpow2.f32 %v770_v3 }
 0x29f   : > { %v1656_v52 = vpop.eup %1655 }
 0x2a0   : > { %v1658_v53 = vpop.eup %1657 }
 0x2a1   : > { %v1660_v54 = vpop.eup %1659  ;;  %v808_v55 = vadd.f32 %v1658_v53, %v1656_v52 }
 0x2a2   : > { %v1662_v56 = vpop.eup %1661 }
 0x2a3   : > { %v1664_v57 = vpop.eup %1663  ;;  %v809_v58 = vadd.f32 %v1660_v54, %v808_v55 }
 0x2a4   : > { %v1666_v59 = vpop.eup %1665 }
 0x2a5   : > { %v810_v60 = vadd.f32 %v1662_v56, %v809_v58  ;;  %v813_v61 = vadd.f32 %v1666_v59, %v1664_v57  ;;  %v1668_v62 = vpop.eup %1667 }
 0x2a6   : > { %v1670_v0 = vpop.eup %1669 }
 0x2a7   : > { %811 = vadd.xlane.f32.xlu0 %v810_v60  ;;  %v814_v63 = vadd.f32 %v1668_v62, %v813_v61  ;;  %v1672_v4 = vpop.eup %1671 }
 0x2a8   : > { %v772_v6 = vmul.f32 %v1672_v4, %v764_v5  ;;  %v1674_v7 = vpop.eup %1673 }
 0x2a9   : > { %v815_v1 = vadd.f32 %v1670_v0, %v814_v63  ;;  %v773_v11 = vmul.f32 %v1674_v7, %v765_v9 }
 0x2ab   : > { %816 = vadd.xlane.f32.xlu1 %v815_v1 }
 0x334   : > { %v812_v8 = vpop.xlane.xlu0 %811 }
 0x335   : > { %v818_v10 = vadd.f32 %v812_v8, %v772_v6  ;;  %828 = sbr.rel (%p1306_p2) target bundleno = 851 (0x353), region = 44 }
 0x337   : > { %821 = vst.msk [vmem:[#allocation3] sm:$0xff] %vm820_vm5, %v818_v10 }
 0x338   : > { %v817_v12 = vpop.xlane.xlu1 %816 }
 0x339   : > { %v819_v13 = vadd.f32 %v817_v12, %v773_v11 }
 0x33b   : > { %822 = vst.msk [vmem:[#allocation3 + $0x8] sm:$0xff] %vm820_vm5, %v819_v13 }
 0x33e   : > { %v831_v14 = vld [vmem:[#allocation3] sm:$0xff] }
 0x33f   : > { %1675 = vlog2.f32 %v831_v14 }
 0x342   : > { %v832_v15 = vld [vmem:[#allocation3 + $0x8] sm:$0xff] }
 0x343   : > { %1677 = vlog2.f32 %v832_v15 }
 0x349   : > { %v1676_v16 = vpop.eup %1675 }
 0x34a   : > { %v834_v19 = vmul.f32 0.6931472, %v1676_v16 }
 0x34c   : > { %v837_v22 = vadd.f32 %v834_v19, %v829_v17 }
 0x34d   : > { %v1678_v18 = vpop.eup %1677 }
 0x34e   : > { %v836_v21 = vmul.f32 0.6931472, %v1678_v18  ;;  %839 = vst.msk [vmem:[%s2151_s10] sm:$0xff] %vm820_vm5, %v837_v22 }
 0x350   : > { %v838_v23 = vadd.f32 %v836_v21, %v830_v20 }
 0x352   : > { %840 = vst.msk [vmem:[%s2151_s10 + $0x8] sm:$0xff] %vm820_vm5, %v838_v23 }
 0x353 PF: > { %851 = sbr.rel (!%p2058_p12) target bundleno = 907 (0x38b), region = 48  ;;  %s854_s22 = ssub.s32 (%p2058_p12), 3, %s2129_s7 }
 0x354   : > { %s1348_s28 = sshll.u32 (%p2058_p12), %s1857_s23, 4  ;;  %p855_p3 = scmp.lt.s32.totalorder (%p2058_p12), %s854_s22, 2 }
 0x355   : > { %s861_s21 = sadd.s32 (%p2058_p12), %s1348_s28, %s2132_s6 }
 0x356   : > { %s1315_s24 = sshll.u32 (%p2058_p12), %s861_s21, 2 }
 0x357   : > { %s2224_s15 = scalar_lea.vmem (%p2058_p12), %s2345_s3, %s1315_s24  }
 0x35a   : > { %s2387_s22 = smov (!%p855_p3, %s854_s22), 2 }
 0x35b   : > { %s1347_s8 = sshll.u32 %s2387_s22, 8 }
 0x35c   : > { %p1316_p5 = scmp.eq.s32.totalorder %s1347_s8, 0 }
 0x35d   : > { %s2228_s13 = sshrl.u32 (!%p1316_p5), %s2387_s22, 1 }
 0x35e   : > { %866 = sbr.rel (%p1316_p5) target bundleno = 907 (0x38b), region = 52  ;;  %p1317_p12 = scmp.le.s32.totalorder (!%p1316_p5), %s2228_s13, 0 }
 0x365   : > { %1142 = sbr.rel (%p1317_p12) target bundleno = 886 (0x376), region = 184  ;;  %s2362_s6 = smov (!%p1317_p12), %s2224_s15 }
 0x366   : > { %s2363_s14 = smov (!%p1317_p12), %s2149_s29  ;;  %s2237_s25 = smov (!%p1317_p12), 0  }
 0x367   : > { %s2239_s5 = smov (!%p1317_p12), 0  }
 0x36c LB: >> { %v879_v24 = vld [vmem:[%s1877_s14] sm:$0xff]  ;;  %v881_v25 = vld [vmem:[%s1877_s14 + $0x10] sm:$0xff]  ;;  %v883_v26 = vld [vmem:[%s1877_s14 + $0x8] sm:$0xff]  ;;  %s887_s27 = sadd.s32 1, %s1881_s25  ;;  %s873_s5 = sadd.s32 1, %s1885_s5   ;;  %s1885_s5 = sphi %s2239_s5, %s873_s5   ;;  %s1881_s25 = sphi %s2237_s25, %s2364_s25   ;;  %s1877_s14 = sphi %s2363_s14, %s892_s14   ;;  %s1873_s6 = sphi %s2362_s6, %s893_s6  }
 0x36d   : >> { %880 = vst [vmem:[%s1873_s6] sm:$0xff] %v879_v24  ;;  %882 = vst [vmem:[%s1873_s6 + $0x20] sm:$0xff] %v881_v25  ;;  %v885_v27 = vld [vmem:[%s1877_s14 + $0x18] sm:$0xff]  ;;  %p888_p6 = scmp.ge.s32.totalorder %s887_s27, %s2228_s13  ;;  %p872_p9 = scmp.ge.s32.totalorder %s873_s5, %s2228_s13 }
 0x36e   : >> { %884 = vst [vmem:[%s1873_s6 + $0x8] sm:$0xff] %v883_v26  ;;  %886 = vst [vmem:[%s1873_s6 + $0x28] sm:$0xff] %v885_v27 }
 0x36f   : >> { %s2389_s27 = smov (%p888_p6, %s887_s27), 0  ;;  %875 = sbr.rel (!%p872_p9) target bundleno = 876 (0x36c), region = 190 }
 0x370   : >> { %s1318_s11 = sshll.u32 %s2389_s27, 5  ;;  %s1319_s28 = sshll.u32 %s2389_s27, 6 }
 0x371   : >> { %s892_s14 = scalar_lea.vmem %s2149_s29, %s1318_s11 [#allocation6]   ;;  %s893_s6 = scalar_lea.vmem %s2224_s15, %s1319_s28  }
 0x372   : >> { %s2364_s25 = smov %s2389_s27 }
 0x376 PF: > { %s2258_s21 = sand.u32 1, %s2387_s22   ;;  %s1349_s24 = sshll.u32 %s2228_s13, 5 }
 0x377   : > { %s2262_s9 = scalar_lea.vmem %s2149_s29, %s1349_s24 [#allocation6]   ;;  %s1350_s17 = sshll.u32 %s2228_s13, 6 }
 0x378   : > { %s2266_s8 = scalar_lea.vmem %s2224_s15, %s1350_s17   ;;  %p1323_p10 = scmp.le.s32.totalorder %s2258_s21, 0 }
 0x379   : > { %s1887_s5 = smov (!%p1323_p10), %s2266_s8   ;;  %s1891_s6 = smov (!%p1323_p10), %s2262_s9  }
 0x37a   : > { %1156 = sbr.rel (%p1323_p10) target bundleno = 907 (0x38b), region = 195  ;;  %s1895_s14 = smov (!%p1323_p10), 0  }
 0x37b   : > { %s1899_s25 = smov (!%p1323_p10), 0  }
 0x381 LB: >> { %v910_v28 = vld [vmem:[%s1893_s6] sm:$0xff]  ;;  %v912_v29 = vld [vmem:[%s1893_s6 + $0x8] sm:$0xff]  ;;  %s914_s29 = sadd.s32 1, %s1897_s14  ;;  %s904_s25 = sadd.s32 1, %s1901_s25   ;;  %s1901_s25 = sphi %s1899_s25, %s904_s25   ;;  %s1897_s14 = sphi %s1895_s14, %s1896_s14   ;;  %s1893_s6 = sphi %s1891_s6, %s919_s6   ;;  %s1889_s5 = sphi %s1887_s5, %s920_s5  }
 0x382   : >> { %911 = vst [vmem:[%s1889_s5] sm:$0xff] %v910_v28  ;;  %913 = vst [vmem:[%s1889_s5 + $0x8] sm:$0xff] %v912_v29  ;;  %p915_p11 = scmp.ge.s32.totalorder %s914_s29, %s2258_s21  ;;  %p903_p7 = scmp.ge.s32.totalorder %s904_s25, %s2258_s21 }
 0x384   : >> { %s2391_s29 = smov (%p915_p11, %s914_s29), 0  ;;  %906 = sbr.rel (!%p903_p7) target bundleno = 897 (0x381), region = 201 }
 0x385   : >> { %s1324_s22 = sshll.u32 %s2391_s29, 4  ;;  %s1325_s15 = sshll.u32 %s2391_s29, 5 }
 0x386   : >> { %s919_s6 = scalar_lea.vmem %s2262_s9, %s1324_s22 [#allocation6]   ;;  %s920_s5 = scalar_lea.vmem %s2266_s8, %s1325_s15  }
 0x387   : >> { %s1896_s14 = smov %s2391_s29  }
 0x38b PF: > { %p2365_p13 = scmp.ne.s32.totalorder %s2361_s30, 0 }
 0x38c   : > { %s928_s13 = ssub.s32 (%p2365_p13), 3, %s2129_s7  ;;  %s1351_s27 = sshll.u32 (%p2365_p13), %s1857_s23, 4 }
 0x38d   : > { %926 = sbr.rel (!%p2365_p13) target bundleno = 965 (0x3c5), region = 78  ;;  %p929_p0 = scmp.lt.s32.totalorder (%p2365_p13), %s928_s13, 2 }
 0x38e   : > { %s2282_s24 = scalar_lea.vmem (%p2365_p13), %s2346_s4, %s1351_s27  }
 0x394   : > { %s2393_s13 = smov (!%p929_p0, %s928_s13), 2 }
 0x395   : > { %s1327_s17 = sshll.u32 %s2393_s13, 7 }
 0x396   : > { %p1330_p1 = scmp.eq.s32.totalorder %s1327_s17, 0 }
 0x397   : > { %s2288_s21 = sshrl.u32 (!%p1330_p1), %s2393_s13, 1 }
 0x398   : > { %937 = sbr.rel (%p1330_p1) target bundleno = 965 (0x3c5), region = 82  ;;  %p1331_p4 = scmp.le.s32.totalorder (!%p1330_p1), %s2288_s21, 0 }
 0x39f   : > { %1170 = sbr.rel (%p1331_p4) target bundleno = 944 (0x3b0), region = 206  ;;  %s1903_s23 = smov (!%p1331_p4), %s2282_s24  }
 0x3a0   : > { %s1907_s30 = smov (!%p1331_p4), %s2151_s10   ;;  %s1911_s7 = smov (!%p1331_p4), 0  }
 0x3a1   : > { %s1915_s9 = smov (!%p1331_p4), 0  }
 0x3a6 LB: >> { %v1001_v30 = vld [vmem:[%s1909_s30] sm:$0xff]  ;;  %v1003_v31 = vld [vmem:[%s1909_s30 + $0x8] sm:$0xff]  ;;  %s1005_s8 = sadd.s32 1, %s1913_s7  ;;  %s995_s9 = sadd.s32 1, %s1917_s9   ;;  %s1917_s9 = sphi %s1915_s9, %s995_s9   ;;  %s1913_s7 = sphi %s1911_s7, %s1912_s7   ;;  %s1909_s30 = sphi %s1907_s30, %s1010_s30   ;;  %s1905_s23 = sphi %s1903_s23, %s1011_s23  }
 0x3a7   : >> { %1002 = vst [vmem:[%s1905_s23] sm:$0xff] %v1001_v30  ;;  %1004 = vst [vmem:[%s1905_s23 + $0x8] sm:$0xff] %v1003_v31  ;;  %p1006_p8 = scmp.ge.s32.totalorder %s1005_s8, %s2288_s21  ;;  %p994_p2 = scmp.ge.s32.totalorder %s995_s9, %s2288_s21 }
 0x3a9   : >> { %s2395_s8 = smov (%p1006_p8, %s1005_s8), 0  ;;  %997 = sbr.rel (!%p994_p2) target bundleno = 934 (0x3a6), region = 212 }
 0x3aa   : >> { %s1332_s5 = sshll.u32 %s2395_s8, 4  ;;  %s1912_s7 = smov %s2395_s8  }
 0x3ab   : >> { %s1010_s30 = scalar_lea.vmem %s2151_s10, %s1332_s5 [#allocation7]   ;;  %s1011_s23 = scalar_lea.vmem %s2282_s24, %s1332_s5  }
 0x3b0 PF: > { %s2298_s6 = sand.u32 1, %s2393_s13   ;;  %s1352_s14 = sshll.u32 %s2288_s21, 4 }
 0x3b1   : > { %s1016_s25 = scalar_lea.vmem %s2151_s10, %s1352_s14 [#allocation7]   ;;  %s1018_s29 = scalar_lea.vmem %s2282_s24, %s1352_s14  }
 0x3b2   : > { %p1337_p3 = scmp.le.s32.totalorder %s2298_s6, 0 }
 0x3b3   : > { %s1919_s22 = smov (!%p1337_p3), %s1018_s29   ;;  %s1923_s15 = smov (!%p1337_p3), %s1016_s25  }
 0x3b4   : > { %1184 = sbr.rel (%p1337_p3) target bundleno = 965 (0x3c5), region = 217  ;;  %s1927_s27 = smov (!%p1337_p3), 0  }
 0x3b5   : > { %s1931_s11 = smov (!%p1337_p3), 0  }
 0x3bb LB: >> { %v1028_v32 = vld [vmem:[%s1925_s15] sm:$0xff]  ;;  %s1030_s13 = sadd.s32 1, %s1929_s27  ;;  %s1022_s11 = sadd.s32 1, %s1933_s11   ;;  %s1933_s11 = sphi %s1931_s11, %s1022_s11   ;;  %s1929_s27 = sphi %s1927_s27, %s1928_s27   ;;  %s1925_s15 = sphi %s1923_s15, %s1035_s15   ;;  %s1921_s22 = sphi %s1919_s22, %s1036_s22  }
 0x3bc   : >> { %1029 = vst [vmem:[%s1921_s22] sm:$0xff] %v1028_v32  ;;  %p1031_p5 = scmp.ge.s32.totalorder %s1030_s13, %s2298_s6  ;;  %p1021_p12 = scmp.ge.s32.totalorder %s1022_s11, %s2298_s6 }
 0x3be   : >> { %s2397_s13 = smov (%p1031_p5, %s1030_s13), 0  ;;  %1024 = sbr.rel (!%p1021_p12) target bundleno = 955 (0x3bb), region = 223 }
 0x3bf   : >> { %s1338_s10 = sshll.u32 %s2397_s13, 3  ;;  %s1928_s27 = smov %s2397_s13  }
 0x3c0   : >> { %s1035_s15 = scalar_lea.vmem %s1016_s25, %s1338_s10 [#allocation7]   ;;  %s1036_s22 = scalar_lea.vmem %s1018_s29, %s1338_s10  }
 0x3c5 PF: > { %s18_s26 = sadd.s32 1, %s1869_s26   ;;  %s2366_s28 = sld [smem:[#allocation9_spill]] }
 0x3c6   : > { %p15_p6 = scmp.ge.s32.totalorder %s18_s26, 6   ;;  %s2367_s21 = sld [smem:[#allocation14_spill]] }
 0x3c7   : > { %s2368_s22 = sld [smem:[#allocation10_spill]]  ;;  %s2369_s23 = sld [smem:[#allocation11_spill]] }
 0x3c8   : > { %s2370_s24 = sld [smem:[#allocation12_spill]]  ;;  %s2371_s25 = sld [smem:[#allocation13_spill]] }
 0x3c9   : > { %s2372_s15 = smov %s1829_s16  ;;  %s2373_s16 = smov %s2066_s19 }
 0x3ca   : > { %s2374_s17 = smov %s1837_s18  ;;  %s2375_s18 = smov %s2056_s12 }
 0x3cb   : > { %s2376_s19 = smov %s1845_s20  ;;  %s2377_s20 = smov %s2366_s28 }
 0x3cc   :  { %17 = sbr.rel (!%p15_p6) target bundleno = 7 (0x7), region = 234 }
 0x3d3   :  { %1059 = vsyncpa [#allocation5], 1 }
 0x3d4   :  { %1061 = vsyncpa [#allocation5 + $0x1], 1 }

</bundles_post_ra>
